<compile_context>
chip_gen: v5e
topology: v5e:2x2
jax: 0.10.0
libtpu: 0.0.40
codegen_flags: <defaults>
</compile_context>

<pallas_src>
import functools

import jax
import jax.numpy as jnp
from jax.experimental import pallas as pl
from jax.experimental.pallas import tpu as pltpu


def _round_up(x, m):
    return ((x + m - 1) // m) * m


# ----------------------------- Pallas kernel ------------------------------ #

def sage_layer_kernel(a_ref, xs_ref, xt_ref, invd_ref, wlt_ref, bl_ref,
                      wrt_ref, o_ref, acc_ref):
    # a_ref    : (tm, tk)  bf16  adjacency tile (targets x sources), binary 0/1
    # xs_ref   : (tk, Hp)  bf16  source-node features for this neighbor tile
    # xt_ref   : (tm, Hp)  bf16  target-node (self/root) features
    # invd_ref : (tm, 1)   f32   1 / max(deg, 1) for the target rows
    # wlt_ref  : (Hp, Hp)  bf16  W_l^T  (pre-transposed on host)
    # bl_ref   : (1, Hp)   f32   b_l
    # wrt_ref  : (Hp, Hp)  bf16  W_r^T  (pre-transposed on host)
    # o_ref    : (tm, Hp)  bf16  output tile
    # acc_ref  : (tm, Hp)  f32   VMEM accumulator for the neighbor sum
    k = pl.program_id(1)

    @pl.when(k == 0)
    def _():
        acc_ref[...] = jnp.zeros_like(acc_ref)

    # neighbor-sum accumulation on the MXU (bf16 inputs, f32 accumulate)
    acc_ref[...] += jnp.dot(a_ref[...], xs_ref[...],
                            preferred_element_type=jnp.float32)

    @pl.when(k == pl.num_programs(1) - 1)
    def _():
        # mean aggregation: degree-0 rows stay all-zero (matches scatter-mean)
        mean = (acc_ref[...] * invd_ref[...]).astype(wlt_ref.dtype)
        out = jnp.dot(mean, wlt_ref[...], preferred_element_type=jnp.float32)
        out = out + bl_ref[...]
        out = out + jnp.dot(xt_ref[...], wrt_ref[...],
                            preferred_element_type=jnp.float32)
        # F.relu; dropout(p=0.5) is identity in eval mode
        # TODO(synk): training-mode dropout (p=0.5) not implemented in-kernel.
        o_ref[...] = jnp.maximum(out, 0.0).astype(o_ref.dtype)


def sage_layer(a, inv_deg, x, wlt, bl, wrt, *, tm, tk):
    """One SAGEConv(H, H) + ReLU layer, tiled over (target rows, neighbors)."""
    npad, hp = x.shape
    assert npad % tm == 0 and npad % tk == 0 and hp % 128 == 0
    grid = (npad // tm, npad // tk)

    flops = 2 * npad * npad * hp + 4 * npad * hp * hp
    bytes_accessed = (npad * npad * 2            # adjacency (bf16)
                      + 3 * npad * hp * 2        # x sources, x self, output
                      + 2 * hp * hp * 2          # weights
                      + npad * 4 + hp * 4)       # inv_deg, bias

    return pl.pallas_call(
        sage_layer_kernel,
        out_shape=jax.ShapeDtypeStruct((npad, hp), jnp.bfloat16),
        grid_spec=pltpu.PrefetchScalarGridSpec(
            num_scalar_prefetch=0,
            grid=grid,
            in_specs=[
                pl.BlockSpec((tm, tk), lambda i, k: (i, k)),   # adjacency tile
                pl.BlockSpec((tk, hp), lambda i, k: (k, 0)),   # source features
                pl.BlockSpec((tm, hp), lambda i, k: (i, 0)),   # self features
                pl.BlockSpec((tm, 1), lambda i, k: (i, 0)),    # 1/deg
                pl.BlockSpec((hp, hp), lambda i, k: (0, 0)),   # W_l^T (resident)
                pl.BlockSpec((1, hp), lambda i, k: (0, 0)),    # b_l   (resident)
                pl.BlockSpec((hp, hp), lambda i, k: (0, 0)),   # W_r^T (resident)
            ],
            out_specs=pl.BlockSpec((tm, hp), lambda i, k: (i, 0)),
            scratch_shapes=[pltpu.VMEM((tm, hp), jnp.float32)],
        ),
        compiler_params=pltpu.CompilerParams(
            dimension_semantics=("parallel", "arbitrary"),
            vmem_limit_bytes=48 * 1024 * 1024,
        ),
        cost_estimate=pl.CostEstimate(
            flops=flops, transcendentals=0, bytes_accessed=bytes_accessed),
    )(a, x, x, inv_deg, wlt, bl, wrt)


# ------------------------------ plain-JAX glue ----------------------------- #

def init_params(key, num_users, num_items, hidden, num_layers):
    """Deterministic synthetic init mirroring GraphRecommender.__init__."""
    keys = jax.random.split(key, 2 + 3 * num_layers)
    # torch.nn.init.normal_(std=0.1) on both embedding tables
    user_w = 0.1 * jax.random.normal(keys[0], (num_users + 1, hidden), jnp.float32)
    item_w = 0.1 * jax.random.normal(keys[1], (num_items + 1, hidden), jnp.float32)
    convs = []
    scale = 1.0 / jnp.sqrt(jnp.float32(hidden))
    for l in range(num_layers):
        k1, k2, k3 = keys[2 + 3 * l: 5 + 3 * l]
        w_l = jax.random.uniform(k1, (hidden, hidden), jnp.float32, -scale, scale)
        w_r = jax.random.uniform(k2, (hidden, hidden), jnp.float32, -scale, scale)
        b_l = jax.random.uniform(k3, (1, hidden), jnp.float32, -scale, scale)
        convs.append((w_l, b_l, w_r))
    # final self.lin (hidden -> 1) and cold-start embeddings are unused in forward().
    return user_w, item_w, convs


def dense_undirected_adj(edge_index, num_nodes):
    """to_undirected(edge_index) + coalesce, materialized as dense binary A."""
    # TODO(synk): for non-toy graphs replace the dense O(N^2) adjacency with a
    # scalar-prefetched CSR / padded-neighbor gather (O(E*H) work).
    src, dst = edge_index[0], edge_index[1]
    a = jnp.zeros((num_nodes, num_nodes), jnp.float32)
    a = a.at[dst, src].set(1.0)   # src -> dst messages
    a = a.at[src, dst].set(1.0)   # reverse edges (undirected)
    return a


def _pick_tiles(n):
    """Prefer 256-wide tiles (v6e/v7x MXU) when the 128-padded node count
    allows; otherwise fall back to 128 (less padding, v5e-friendly)."""
    npad = _round_up(n, 128)
    tile = 256 if npad % 256 == 0 else 128
    return npad, tile


def graph_recommender_forward(params, edge_index):
    user_w, item_w, convs = params
    # x = cat([user_embedding.weight, item_embedding.weight], dim=0)
    x = jnp.concatenate([user_w, item_w], axis=0)
    n, h = x.shape

    # --- pad to lane-dense / MXU-friendly shapes (zero padding is exact:
    #     zero adjacency rows + zero weight/bias lanes stay zero through relu)
    hp = _round_up(h, 128)
    npad, tile = _pick_tiles(n)

    a = dense_undirected_adj(edge_index, n)
    a_p = jnp.zeros((npad, npad), jnp.float32).at[:n, :n].set(a)
    deg = jnp.sum(a_p, axis=1, keepdims=True)
    inv_deg = 1.0 / jnp.maximum(deg, 1.0)                 # (npad, 1) f32, hoisted
    a_bf = a_p.astype(jnp.bfloat16)                       # binary -> exact in bf16

    x_p = jnp.zeros((npad, hp), jnp.bfloat16).at[:n, :h].set(x.astype(jnp.bfloat16))

    for (w_l, b_l, w_r) in convs:
        # pre-transpose + zero-pad weights once on the host (no in-kernel .T)
        wlt = jnp.zeros((hp, hp), jnp.bfloat16).at[:h, :h].set(
            w_l.T.astype(jnp.bfloat16))
        wrt = jnp.zeros((hp, hp), jnp.bfloat16).at[:h, :h].set(
            w_r.T.astype(jnp.bfloat16))
        blp = jnp.zeros((1, hp), jnp.float32).at[:, :h].set(b_l)
        x_p = sage_layer(a_bf, inv_deg, x_p, wlt, blp, wrt, tm=tile, tk=tile)

    return x_p[:n, :h].astype(jnp.float32)


def reference_forward(params, edge_index):
    """Pure-JAX f32 reference (SAGEConv mean aggr + root weight + relu)."""
    user_w, item_w, convs = params
    x = jnp.concatenate([user_w, item_w], axis=0)
    n = x.shape[0]
    a = dense_undirected_adj(edge_index, n)
    inv_deg = 1.0 / jnp.maximum(jnp.sum(a, axis=1, keepdims=True), 1.0)
    for (w_l, b_l, w_r) in convs:
        mean = (a @ x) * inv_deg
        x = jnp.maximum(mean @ w_l.T + b_l + x @ w_r.T, 0.0)
    return x


# ---------------------------------- main ----------------------------------- #

if __name__ == "__main__":
    num_users = 7     # -> user table has 8 rows
    num_items = 7     # -> item table has 8 rows
    hidden = 32
    num_layers = 2
    n_nodes = (num_users + 1) + (num_items + 1)   # 16

    key = jax.random.PRNGKey(0)
    k_param, k_src, k_dst = jax.random.split(key, 3)
    params = init_params(k_param, num_users, num_items, hidden, num_layers)

    # synthetic bipartite-ish edge list: (2, E) int32, user node -> item node
    num_edges = 24
    src = jax.random.randint(k_src, (num_edges,), 0, num_users + 1)
    dst = jax.random.randint(k_dst, (num_edges,), num_users + 1, n_nodes)
    edge_index = jnp.stack([src, dst]).astype(jnp.int32)

    forward = jax.jit(graph_recommender_forward)
    out = jax.block_until_ready(forward(params, edge_index))

    assert out.shape == (n_nodes, hidden)
    assert bool(jnp.all(jnp.isfinite(out)))

    # correctness check against the pure-JAX f32 reference (bf16 kernel inputs
    # -> loose absolute tolerance; values are O(0.1))
    ref = reference_forward(params, edge_index)
    max_err = float(jnp.max(jnp.abs(out - ref)))
    assert max_err < 5e-2, f"max abs error vs reference: {max_err}"

    print("KERNEL_OK")
</pallas_src>

<mosaic_0001>
module attributes {stable_mosaic.version = 11 : i64} {
  func.func @sage_layer_kernel(%arg0: i32, %arg1: i32, %arg2: memref<128x128xbf16, #tpu.memory_space<vmem>>, %arg3: memref<128x128xbf16, #tpu.memory_space<vmem>>, %arg4: memref<128x128xbf16, #tpu.memory_space<vmem>>, %arg5: memref<128x1xf32, #tpu.memory_space<vmem>>, %arg6: memref<128x128xbf16, #tpu.memory_space<vmem>>, %arg7: memref<1x128xf32, #tpu.memory_space<vmem>>, %arg8: memref<128x128xbf16, #tpu.memory_space<vmem>>, %arg9: memref<128x128xbf16, #tpu.memory_space<vmem>>, %arg10: memref<128x128xf32, #tpu.memory_space<vmem>>) attributes {dimension_semantics = [#tpu.dimension_semantics<parallel>, #tpu.dimension_semantics<arbitrary>], iteration_bounds = array<i64: 1, 1>, scalar_prefetch = 0 : i64, scratch_operands = 1 : i64, tpu.core_type = #tpu.core_type<tc>, window_params = [{transform_indices = @transform_0, window_bounds = array<i64: 128, 128>}, {transform_indices = @transform_1, window_bounds = array<i64: 128, 128>}, {transform_indices = @transform_2, window_bounds = array<i64: 128, 128>}, {transform_indices = @transform_3, window_bounds = array<i64: 128, 1>}, {pipeline_mode = #tpu.pipeline_mode<synchronous>, transform_indices = @transform_4, window_bounds = array<i64: 128, 128>}, {pipeline_mode = #tpu.pipeline_mode<synchronous>, transform_indices = @transform_5, window_bounds = array<i64: 1, 128>}, {pipeline_mode = #tpu.pipeline_mode<synchronous>, transform_indices = @transform_6, window_bounds = array<i64: 128, 128>}, {transform_indices = @transform_7, window_bounds = array<i64: 128, 128>}]} {
    %c0_i32 = arith.constant 0 : i32
    %0 = arith.cmpi eq, %arg1, %c0_i32 : i32
    %1 = arith.extui %0 : i1 to i32
    %c0_i32_0 = arith.constant 0 : i32
    %2 = arith.cmpi ne, %1, %c0_i32_0 : i32
    scf.if %2 {
      %cst_10 = arith.constant 0.000000e+00 : f32
      %12 = vector.broadcast %cst_10 : f32 to vector<128x128xf32>
      %c0_11 = arith.constant 0 : index
      %c0_12 = arith.constant 0 : index
      %13 = vector.load %arg10[%c0_11, %c0_12] : memref<128x128xf32, #tpu.memory_space<vmem>>, vector<128x128xf32>
      tpu.vector_store %arg10[%c0_11, %c0_12], %12 {strides = array<i32>} : memref<128x128xf32, #tpu.memory_space<vmem>>, vector<128x128xf32>,
    } else {
    }
    %c0 = arith.constant 0 : index
    %c0_1 = arith.constant 0 : index
    %3 = vector.load %arg10[%c0, %c0_1] : memref<128x128xf32, #tpu.memory_space<vmem>>, vector<128x128xf32>
    %c0_2 = arith.constant 0 : index
    %c0_3 = arith.constant 0 : index
    %4 = vector.load %arg2[%c0_2, %c0_3] : memref<128x128xbf16, #tpu.memory_space<vmem>>, vector<128x128xbf16>
    %c0_4 = arith.constant 0 : index
    %c0_5 = arith.constant 0 : index
    %5 = vector.load %arg3[%c0_4, %c0_5] : memref<128x128xbf16, #tpu.memory_space<vmem>>, vector<128x128xbf16>
    %cst = arith.constant dense<0.000000e+00> : vector<128x128xf32>
    %6 = tpu.matmul %4, %5, %cst {dimension_numbers = #tpu.dot_dimension_numbers<[1], [0], [0], [1], [0, 0, 1, 1], [], []>} : vector<128x128xbf16>, vector<128x128xbf16>, vector<128x128xf32> -> vector<128x128xf32>
    %7 = arith.addf %3, %6 : vector<128x128xf32>
    %c0_6 = arith.constant 0 : index
    %c0_7 = arith.constant 0 : index
    %8 = vector.load %arg10[%c0_6, %c0_7] : memref<128x128xf32, #tpu.memory_space<vmem>>, vector<128x128xf32>
    tpu.vector_store %arg10[%c0_6, %c0_7], %7 {strides = array<i32>} : memref<128x128xf32, #tpu.memory_space<vmem>>, vector<128x128xf32>,
    %c0_i32_8 = arith.constant 0 : i32
    %9 = arith.cmpi eq, %arg1, %c0_i32_8 : i32
    %10 = arith.extui %9 : i1 to i32
    %c0_i32_9 = arith.constant 0 : i32
    %11 = arith.cmpi ne, %10, %c0_i32_9 : i32
    scf.if %11 {
      %c0_10 = arith.constant 0 : index
      %c0_11 = arith.constant 0 : index
      %12 = vector.load %arg10[%c0_10, %c0_11] : memref<128x128xf32, #tpu.memory_space<vmem>>, vector<128x128xf32>
      %c0_12 = arith.constant 0 : index
      %c0_13 = arith.constant 0 : index
      %13 = vector.load %arg5[%c0_12, %c0_13] : memref<128x1xf32, #tpu.memory_space<vmem>>, vector<128x1xf32>
      %14 = vector.broadcast %13 : vector<128x1xf32> to vector<128x128xf32>
      %15 = arith.mulf %12, %14 : vector<128x128xf32>
      %16 = arith.truncf %15 : vector<128x128xf32> to vector<128x128xbf16>
      %c0_14 = arith.constant 0 : index
      %c0_15 = arith.constant 0 : index
      %17 = vector.load %arg6[%c0_14, %c0_15] : memref<128x128xbf16, #tpu.memory_space<vmem>>, vector<128x128xbf16>
      %cst_16 = arith.constant dense<0.000000e+00> : vector<128x128xf32>
      %18 = tpu.matmul %16, %17, %cst_16 {dimension_numbers = #tpu.dot_dimension_numbers<[1], [0], [0], [1], [0, 0, 1, 1], [], []>} : vector<128x128xbf16>, vector<128x128xbf16>, vector<128x128xf32> -> vector<128x128xf32>
      %c0_17 = arith.constant 0 : index
      %c0_18 = arith.constant 0 : index
      %19 = vector.load %arg7[%c0_17, %c0_18] : memref<1x128xf32, #tpu.memory_space<vmem>>, vector<1x128xf32>
      %20 = vector.broadcast %19 : vector<1x128xf32> to vector<128x128xf32>
      %21 = arith.addf %18, %20 : vector<128x128xf32>
      %c0_19 = arith.constant 0 : index
      %c0_20 = arith.constant 0 : index
      %22 = vector.load %arg4[%c0_19, %c0_20] : memref<128x128xbf16, #tpu.memory_space<vmem>>, vector<128x128xbf16>
      %c0_21 = arith.constant 0 : index
      %c0_22 = arith.constant 0 : index
      %23 = vector.load %arg8[%c0_21, %c0_22] : memref<128x128xbf16, #tpu.memory_space<vmem>>, vector<128x128xbf16>
      %cst_23 = arith.constant dense<0.000000e+00> : vector<128x128xf32>
      %24 = tpu.matmul %22, %23, %cst_23 {dimension_numbers = #tpu.dot_dimension_numbers<[1], [0], [0], [1], [0, 0, 1, 1], [], []>} : vector<128x128xbf16>, vector<128x128xbf16>, vector<128x128xf32> -> vector<128x128xf32>
      %25 = arith.addf %21, %24 : vector<128x128xf32>
      %cst_24 = arith.constant 0.000000e+00 : f32
      %26 = vector.broadcast %cst_24 : f32 to vector<128x128xf32>
      %27 = arith.maximumf %25, %26 : vector<128x128xf32>
      %28 = arith.truncf %27 : vector<128x128xf32> to vector<128x128xbf16>
      %c0_25 = arith.constant 0 : index
      %c0_26 = arith.constant 0 : index
      %29 = vector.load %arg9[%c0_25, %c0_26] : memref<128x128xbf16, #tpu.memory_space<vmem>>, vector<128x128xbf16>
      tpu.vector_store %arg9[%c0_25, %c0_26], %28 {strides = array<i32>} : memref<128x128xbf16, #tpu.memory_space<vmem>>, vector<128x128xbf16>,
    } else {
    }
    return
  }
  func.func @transform_0(%arg0: i32, %arg1: i32) -> (i32, i32) {
    %c0_i32 = arith.constant 0 : i32
    return %arg0, %arg1 : i32, i32
  }
  func.func @transform_1(%arg0: i32, %arg1: i32) -> (i32, i32) {
    %c0_i32 = arith.constant 0 : i32
    %c0_i32_0 = arith.constant 0 : i32
    return %arg1, %c0_i32 : i32, i32
  }
  func.func @transform_2(%arg0: i32, %arg1: i32) -> (i32, i32) {
    %c0_i32 = arith.constant 0 : i32
    %c0_i32_0 = arith.constant 0 : i32
    return %arg0, %c0_i32 : i32, i32
  }
  func.func @transform_3(%arg0: i32, %arg1: i32) -> (i32, i32) {
    %c0_i32 = arith.constant 0 : i32
    %c0_i32_0 = arith.constant 0 : i32
    return %arg0, %c0_i32 : i32, i32
  }
  func.func @transform_4(%arg0: i32, %arg1: i32) -> (i32, i32) {
    %c0_i32 = arith.constant 0 : i32
    %c0_i32_0 = arith.constant 0 : i32
    %c0_i32_1 = arith.constant 0 : i32
    return %c0_i32, %c0_i32_0 : i32, i32
  }
  func.func @transform_5(%arg0: i32, %arg1: i32) -> (i32, i32) {
    %c0_i32 = arith.constant 0 : i32
    %c0_i32_0 = arith.constant 0 : i32
    %c0_i32_1 = arith.constant 0 : i32
    return %c0_i32, %c0_i32_0 : i32, i32
  }
  func.func @transform_6(%arg0: i32, %arg1: i32) -> (i32, i32) {
    %c0_i32 = arith.constant 0 : i32
    %c0_i32_0 = arith.constant 0 : i32
    %c0_i32_1 = arith.constant 0 : i32
    return %c0_i32, %c0_i32_0 : i32, i32
  }
  func.func @transform_7(%arg0: i32, %arg1: i32) -> (i32, i32) {
    %c0_i32 = arith.constant 0 : i32
    %c0_i32_0 = arith.constant 0 : i32
    return %arg0, %c0_i32 : i32, i32
  }
}

</mosaic_0001>

<bundles_post_ra>
// kernel: graph_recommender_forward.2
= control target key start
LH: loop header
LB: loop body
LE: loop exit
PB: predicated region body
PF: predicated region fallthrough
CT: control target
= control target key end

     0   :  { %v1048_v1 = vmov 0   ;;  %s1302_s1 = inlined_call_operand.vmem [shape: bf16[128,128], index: 1, kind: input, shape index: {}, may-alias: {1,2}]   ;;  %s1303_s3 = inlined_call_operand.vmem [shape: f32[128,1], index: 3, kind: input, shape index: {}]   ;;  %s1304_s0 = inlined_call_operand.vmem [shape: bf16[128,128], index: 0, kind: input, shape index: {}]   ;;  %s1305_s6 = inlined_call_operand.vmem [shape: bf16[128,128], index: 6, kind: input, shape index: {}]   ;;  %s1306_s4 = inlined_call_operand.vmem [shape: bf16[128,128], index: 4, kind: input, shape index: {}]   ;;  %s1307_s2 = inlined_call_operand.vmem [shape: bf16[128,128], index: 2, kind: input, shape index: {}, may-alias: {1,2}]   ;;  %s1308_s5 = inlined_call_operand.vmem [shape: f32[1,128], index: 5, kind: input, shape index: {}]   ;;  %s1309_s7 = inlined_call_operand.vmem [shape: bf16[128,128], index: 7, kind: output, shape index: {}]  }
   0x1   :  { %v947_v0 = vld [vmem:[%s1302_s1 + $0x38] sm:$0xff]  ;;  %1044 = vset.pattern.permute.xlu0 %v1048_v1  ;;  %v290_v2 = vld [vmem:[%s1303_s3] sm:$0xff]  ;;  %1045 = vset.pattern.permute.xlu1 %v1048_v1  ;;  %v946_v3 = vld [vmem:[%s1302_s1 + $0x30] sm:$0xff] }
   0x2   :  { %308 = vperm.xlu0 %1044, %v290_v2   ;;  %1046 = vset.pattern.permute.xlu2 %v1048_v1  ;;  %v292_v4 = vld [vmem:[%s1303_s3 + $0x10] sm:$0xff]  ;;  %v945_v5 = vld [vmem:[%s1302_s1 + $0x28] sm:$0xff]  ;;  %v293_v7 = vld [vmem:[%s1303_s3 + $0x18] sm:$0xff] }
   0x3   :  { %190 = vmatpush.bf16.msra.mxu0 %v947_v0  ;;  %1019 = vmatpush.bf16.msra.mxu3 %v947_v0  ;;  %v291_v6 = vld [vmem:[%s1303_s3 + $0x8] sm:$0xff]  ;;  %v944_v8 = vld [vmem:[%s1302_s1 + $0x20] sm:$0xff]  ;;  %v943_v9 = vld [vmem:[%s1302_s1 + $0x18] sm:$0xff] }
   0x4   :  { %318 = vperm.xlu1 %1045, %v292_v4   ;;  %v294_v10 = vld [vmem:[%s1303_s3 + $0x20] sm:$0xff]  ;;  %v295_v11 = vld [vmem:[%s1303_s3 + $0x28] sm:$0xff]  ;;  %v942_v13 = vld [vmem:[%s1302_s1 + $0x10] sm:$0xff] }
   0x5   :  { %v302_v12 = vld [vmem:[%s1303_s3 + $0x60] sm:$0xff]  ;;  %v941_v14 = vld [vmem:[%s1302_s1 + $0x8] sm:$0xff]  ;;  %v305_v15 = vld [vmem:[%s1303_s3 + $0x78] sm:$0xff] }
   0x6   :  { %368 = vperm.xlu2 %1046, %v302_v12   ;;  %v296_v16 = vld [vmem:[%s1303_s3 + $0x30] sm:$0xff]  ;;  %v940_v17 = vld [vmem:[%s1302_s1] sm:$0xff]  ;;  %v299_v21 = vld [vmem:[%s1303_s3 + $0x48] sm:$0xff] }
   0x7   :  { %191 = vmatpush.bf16.msra.mxu0 %v946_v3  ;;  %1020 = vmatpush.bf16.msra.mxu3 %v946_v3  ;;  %v932_v18 = vld [vmem:[%s1304_s0] sm:$0xff]  ;;  %v938_v19 = vld [vmem:[%s1304_s0 + $0x30] sm:$0xff]  ;;  %v303_v22 = vld [vmem:[%s1303_s3 + $0x68] sm:$0xff] }
   0x8   :  { %v298_v20 = vld [vmem:[%s1303_s3 + $0x40] sm:$0xff]  ;;  %v301_v23 = vld [vmem:[%s1303_s3 + $0x58] sm:$0xff]  ;;  %v304_v24 = vld [vmem:[%s1303_s3 + $0x70] sm:$0xff] }
   0x9   :  { %v933_v25 = vld [vmem:[%s1304_s0 + $0x8] sm:$0xff]  ;;  %v939_v26 = vld [vmem:[%s1304_s0 + $0x38] sm:$0xff]  ;;  %v300_v28 = vld [vmem:[%s1303_s3 + $0x50] sm:$0xff] }
   0xa   :  { %313 = vperm.xlu0 %1044, %v291_v6   ;;  %v297_v27 = vld [vmem:[%s1303_s3 + $0x38] sm:$0xff]  ;;  %v934_v29 = vld [vmem:[%s1304_s0 + $0x10] sm:$0xff]  ;;  %v936_v32 = vld [vmem:[%s1304_s0 + $0x20] sm:$0xff] }
   0xb   :  { %192 = vmatpush.bf16.msra.mxu0 %v945_v5  ;;  %1021 = vmatpush.bf16.msra.mxu3 %v945_v5  ;;  %v935_v30 = vld [vmem:[%s1304_s0 + $0x18] sm:$0xff]  ;;  %v970_v33 = vld [vmem:[%s1305_s6 + $0x30] sm:$0xff]  ;;  %v969_v34 = vld [vmem:[%s1305_s6 + $0x28] sm:$0xff] }
   0xc   :  { %323 = vperm.xlu1 %1045, %v293_v7   ;;  %v971_v31 = vld [vmem:[%s1305_s6 + $0x38] sm:$0xff]  ;;  %v968_v36 = vld [vmem:[%s1305_s6 + $0x20] sm:$0xff]  ;;  %v954_v37 = vld [vmem:[%s1306_s4 + $0x30] sm:$0xff] }
   0xd   :  { %655 = vmatpush.bf16.msra.mxu2 %v971_v31  ;;  %v955_v35 = vld [vmem:[%s1306_s4 + $0x38] sm:$0xff]  ;;  %v937_v39 = vld [vmem:[%s1304_s0 + $0x28] sm:$0xff]  ;;  %v966_v41 = vld [vmem:[%s1305_s6 + $0x10] sm:$0xff] }
   0xe   :  { %373 = vperm.xlu2 %1046, %v303_v22   ;;  %478 = vmatpush.bf16.msra.mxu1 %v955_v35  ;;  %v967_v38 = vld [vmem:[%s1305_s6 + $0x18] sm:$0xff]  ;;  %v953_v40 = vld [vmem:[%s1306_s4 + $0x28] sm:$0xff]  ;;  %v952_v42 = vld [vmem:[%s1306_s4 + $0x20] sm:$0xff] }
   0xf   :  { %193 = vmatpush.bf16.msra.mxu0 %v944_v8  ;;  %1022 = vmatpush.bf16.msra.mxu3 %v944_v8  ;;  %v965_v43 = vld [vmem:[%s1305_s6 + $0x8] sm:$0xff]  ;;  %v951_v44 = vld [vmem:[%s1306_s4 + $0x18] sm:$0xff]  ;;  %v964_v45 = vld [vmem:[%s1305_s6] sm:$0xff] }
  0x10   :  { %v956_v46 = vld [vmem:[%s1307_s2] sm:$0xff]  ;;  %v950_v47 = vld [vmem:[%s1306_s4 + $0x10] sm:$0xff]  ;;  %v949_v48 = vld [vmem:[%s1306_s4 + $0x8] sm:$0xff] }
  0x11   :  { %656 = vmatpush.bf16.msra.mxu2 %v970_v33  ;;  %v948_v49 = vld [vmem:[%s1306_s4] sm:$0xff]  ;;  %v957_v50 = vld [vmem:[%s1307_s2 + $0x8] sm:$0xff]  ;;  %v958_v52 = vld [vmem:[%s1307_s2 + $0x10] sm:$0xff] }
  0x12   :  { %328 = vperm.xlu0 %1044, %v294_v10   ;;  %479 = vmatpush.bf16.msra.mxu1 %v954_v37  ;;  %v959_v2 = vld [vmem:[%s1307_s2 + $0x18] sm:$0xff] }
  0x13   :  { %194 = vmatpush.bf16.msra.mxu0 %v943_v9  ;;  %1023 = vmatpush.bf16.msra.mxu3 %v943_v9 }
  0x14   :  { %333 = vperm.xlu1 %1045, %v295_v11  }
  0x15   :  { %657 = vmatpush.bf16.msra.mxu2 %v969_v34 }
  0x16   :  { %378 = vperm.xlu2 %1046, %v304_v24   ;;  %480 = vmatpush.bf16.msra.mxu1 %v953_v40 }
  0x17   :  { %195 = vmatpush.bf16.msra.mxu0 %v942_v13  ;;  %1024 = vmatpush.bf16.msra.mxu3 %v942_v13 }
  0x19   :  { %658 = vmatpush.bf16.msra.mxu2 %v968_v36 }
  0x1a   :  { %383 = vperm.xlu0 %1044, %v305_v15   ;;  %481 = vmatpush.bf16.msra.mxu1 %v952_v42 }
  0x1b   :  { %196 = vmatpush.bf16.msra.mxu0 %v941_v14  ;;  %1025 = vmatpush.bf16.msra.mxu3 %v941_v14 }
  0x1c   :  { %338 = vperm.xlu1 %1045, %v296_v16  }
  0x1d   :  { %659 = vmatpush.bf16.msra.mxu2 %v967_v38 }
  0x1e   :  { %343 = vperm.xlu2 %1046, %v297_v27   ;;  %482 = vmatpush.bf16.msra.mxu1 %v951_v44 }
  0x1f   :  { %197 = vmatpush.bf16.msra.mxu0 %v940_v17  ;;  %1026 = vmatpush.bf16.msra.mxu3 %v940_v17  ;;  %v960_v17 = vld [vmem:[%s1307_s2 + $0x20] sm:$0xff] }
  0x21   :  { %660 = vmatpush.bf16.msra.mxu2 %v966_v41 }
  0x22   :  { %198 = vmatmul.bf16.vlgmr.msra.gmra.mxu0 %v932_v18  ;;  %228 = vmatmul.bf16.vlgmr.msra.gmra.mxu3 %v938_v19 }
  0x23   :  { %348 = vperm.xlu0 %1044, %v298_v20   ;;  %1027 = vmatpush.bf16.msrb.mxu3 %v955_v35 }
  0x24   :  { %353 = vperm.xlu1 %1045, %v299_v21   ;;  %483 = vmatpush.bf16.msra.mxu1 %v950_v47 }
  0x25   :  { %661 = vmatpush.bf16.msra.mxu2 %v965_v43 }
  0x26   :  { %358 = vperm.xlu2 %1046, %v300_v28  }
  0x27   :  { %1028 = vmatpush.bf16.msrb.mxu3 %v954_v37 }
  0x28   :  { %484 = vmatpush.bf16.msra.mxu1 %v949_v48 }
  0x29   :  { %662 = vmatpush.bf16.msra.mxu2 %v964_v45 }
  0x2b   :  { %363 = vperm.xlu0 %1044, %v301_v23   ;;  %1029 = vmatpush.bf16.msrb.mxu3 %v953_v40 }
  0x2c   :  { %663 = vmatmul.bf16.vlgmr.msra.gmra.mxu2 %v956_v46  ;;  %485 = vmatpush.bf16.msra.mxu1 %v948_v49 }
  0x2f   :  { %1030 = vmatpush.bf16.msrb.mxu3 %v952_v42 }
  0x32   :  { %203 = vmatmul.bf16.gmra.mxu0 %v933_v25  ;;  %233 = vmatmul.bf16.gmra.mxu3 %v939_v26  ;;  %v962_v25 = vld [vmem:[%s1307_s2 + $0x30] sm:$0xff]  ;;  %v961_v26 = vld [vmem:[%s1307_s2 + $0x28] sm:$0xff] }
  0x33   :  { %1031 = vmatpush.bf16.msrb.mxu3 %v951_v44 }
  0x37   :  { %1032 = vmatpush.bf16.msrb.mxu3 %v950_v47 }
  0x3b   :  { %1033 = vmatpush.bf16.msrb.mxu3 %v949_v48 }
  0x3c   :  { %668 = vmatmul.bf16.gmra.mxu2 %v957_v50 }
  0x3f   :  { %1034 = vmatpush.bf16.msrb.mxu3 %v948_v49 }
  0x42   :  { %208 = vmatmul.bf16.gmra.mxu0 %v934_v29 }
  0x43   :  { %1035 = vmatpush.bf16.msra.mxu3 %v971_v31 }
  0x47   :  { %1036 = vmatpush.bf16.msra.mxu3 %v970_v33 }
  0x4b   :  { %1037 = vmatpush.bf16.msra.mxu3 %v969_v34  ;;  %v963_v34 = vld [vmem:[%s1307_s2 + $0x38] sm:$0xff] }
  0x4c   :  { %673 = vmatmul.bf16.gmra.mxu2 %v958_v52 }
  0x4f   :  { %1038 = vmatpush.bf16.msra.mxu3 %v968_v36 }
  0x52   :  { %213 = vmatmul.bf16.gmra.mxu0 %v935_v30 }
  0x53   :  { %1039 = vmatpush.bf16.msra.mxu3 %v967_v38 }
  0x57   :  { %1040 = vmatpush.bf16.msra.mxu3 %v966_v41 }
  0x5b   :  { %1041 = vmatpush.bf16.msra.mxu3 %v965_v43 }
  0x5c   :  { %678 = vmatmul.bf16.gmra.mxu2 %v959_v2 }
  0x5f   :  { %1042 = vmatpush.bf16.msra.mxu3 %v964_v45 }
  0x60   :  { %v369_v54 = vpop.permute.xlu2 %368 }
  0x62   :  { %218 = vmatmul.bf16.gmra.mxu0 %v936_v32 }
  0x68   :  { %v374_v63 = vpop.permute.xlu2 %373 }
  0x6c   :  { %683 = vmatmul.bf16.gmra.mxu2 %v960_v17 }
  0x70   :  { %v379_v12 = vpop.permute.xlu2 %378 }
  0x72   :  { %223 = vmatmul.bf16.gmra.mxu0 %v937_v39 }
  0x74   :  { %v309_v51 = vpop.permute.xlu0 %308 }
  0x76   :  { %v319_v61 = vpop.permute.xlu1 %318 }
  0x78   :  { %v344_v29 = vpop.permute.xlu2 %343 }
  0x7c   :  { %v314_v56 = vpop.permute.xlu0 %313  ;;  %688 = vmatmul.bf16.gmra.mxu2 %v961_v26 }
  0x7e   :  { %v324_v7 = vpop.permute.xlu1 %323 }
  0x80   :  { %v359_v43 = vpop.permute.xlu2 %358 }
  0x84   :  { %v329_v5 = vpop.permute.xlu0 %328 }
  0x86   :  { %v334_v20 = vpop.permute.xlu1 %333 }
  0x8c   :  { %v384_v13 = vpop.permute.xlu0 %383 }
  0x8e   :  { %v339_v28 = vpop.permute.xlu1 %338 }
  0x95   :  { %v349_v36 = vpop.permute.xlu0 %348 }
  0x96   :  { %v354_v37 = vpop.permute.xlu1 %353 }
  0x9d   :  { %v364_v44 = vpop.permute.xlu0 %363 }
  0x9f   :  { %v199_v53 = vpop.f32.mrf.mxu0 }
  0xa0   :  { %v386_v58 = vmul.f32 %v309_v51, %v199_v53  ;;  %v1260_v53 = vld [vmem:[%s1308_s5] ss:$0 sm:$0xff] }
  0xa5   :  { %v229_v55 = vpop.f32.mrf.mxu3 }
  0xa6   :  { %v398_v62 = vmul.f32 %v369_v54, %v229_v55 }
  0xa7   :  { %v201_v57 = vpop.f32.mrf.mxu0 }
  0xa8   :  { %v387_v59 = vmul.f32 %v314_v56, %v201_v57 }
  0xaa   :  { %v402_v60 = vpack.c.bf16 %v387_v59, %v386_v58 }
  0xac   :  { %486 = vmatmul.bf16.vlgmr.msra.gmra.mxu1 %v402_v60 }
  0xad   :  { %v231_v0 = vpop.f32.mrf.mxu3 }
  0xae   :  { %v399_v1 = vmul.f32 %v374_v63, %v231_v0 }
  0xaf   :  { %v204_v3 = vpop.f32.mrf.mxu0  ;;  %v664_v49 = vpop.f32.mrf.mxu2 }
  0xb0   :  { %v408_v4 = vpack.c.bf16 %v399_v1, %v398_v62  ;;  %v388_v9 = vmul.f32 %v319_v61, %v204_v3 }
  0xb2   :  { %516 = vmatmul.bf16.vlgmr.msrb.gmra.mxu3 %v408_v4 }
  0xb5   :  { %v234_v6 = vpop.f32.mrf.mxu3 }
  0xb6   :  { %v400_v15 = vmul.f32 %v379_v12, %v234_v6 }
  0xb7   :  { %v206_v8 = vpop.f32.mrf.mxu0  ;;  %v666_v50 = vpop.f32.mrf.mxu2 }
  0xb8   :  { %v389_v10 = vmul.f32 %v324_v7, %v206_v8 }
  0xba   :  { %v403_v11 = vpack.c.bf16 %v389_v10, %v388_v9 }
  0xbc   :  { %491 = vmatmul.bf16.gmra.mxu1 %v403_v11 }
  0xbd   :  { %v236_v14 = vpop.f32.mrf.mxu3 }
  0xbe   :  { %v401_v16 = vmul.f32 %v384_v13, %v236_v14 }
  0xbf   :  { %v209_v18 = vpop.f32.mrf.mxu0  ;;  %v669_v52 = vpop.f32.mrf.mxu2 }
  0xc0   :  { %v409_v19 = vpack.c.bf16 %v401_v16, %v400_v15  ;;  %v390_v22 = vmul.f32 %v329_v5, %v209_v18 }
  0xc2   :  { %521 = vmatmul.bf16.gmra.mxu3 %v409_v19 }
  0xc7   :  { %v211_v21 = vpop.f32.mrf.mxu0  ;;  %v671_v58 = vpop.f32.mrf.mxu2 }
  0xc8   :  { %v391_v23 = vmul.f32 %v334_v20, %v211_v21 }
  0xca   :  { %v404_v24 = vpack.c.bf16 %v391_v23, %v390_v22 }
  0xcc   :  { %496 = vmatmul.bf16.gmra.mxu1 %v404_v24 }
  0xcf   :  { %v214_v27 = vpop.f32.mrf.mxu0  ;;  %v674_v2 = vpop.f32.mrf.mxu2 }
  0xd0   :  { %v392_v31 = vmul.f32 %v339_v28, %v214_v27 }
  0xd2   :  { %693 = vmatmul.bf16.vlgmr.msra.gmra.mxu3 %v962_v25 }
  0xd7   :  { %v216_v30 = vpop.f32.mrf.mxu0  ;;  %v676_v11 = vpop.f32.mrf.mxu2 }
  0xd8   :  { %v393_v32 = vmul.f32 %v344_v29, %v216_v30 }
  0xda   :  { %v405_v33 = vpack.c.bf16 %v393_v32, %v392_v31 }
  0xdc   :  { %501 = vmatmul.bf16.gmra.mxu1 %v405_v33 }
  0xdf   :  { %v219_v35 = vpop.f32.mrf.mxu0  ;;  %v679_v17 = vpop.f32.mrf.mxu2 }
  0xe0   :  { %v394_v39 = vmul.f32 %v349_v36, %v219_v35 }
  0xe2   :  { %698 = vmatmul.bf16.gmra.mxu3 %v963_v34 }
  0xe7   :  { %v221_v38 = vpop.f32.mrf.mxu0  ;;  %v681_v27 = vpop.f32.mrf.mxu2 }
  0xe8   :  { %v395_v40 = vmul.f32 %v354_v37, %v221_v38 }
  0xea   :  { %v406_v41 = vpack.c.bf16 %v395_v40, %v394_v39 }
  0xec   :  { %506 = vmatmul.bf16.gmra.mxu1 %v406_v41 }
  0xef   :  { %v224_v42 = vpop.f32.mrf.mxu0  ;;  %v684_v40 = vpop.f32.mrf.mxu2 }
  0xf0   :  { %v396_v46 = vmul.f32 %v359_v43, %v224_v42 }
  0xf7   :  { %v226_v45 = vpop.f32.mrf.mxu0 }
  0xf8   :  { %v397_v47 = vmul.f32 %v364_v44, %v226_v45 }
  0xfa   :  { %v407_v48 = vpack.c.bf16 %v397_v47, %v396_v46 }
  0xfc   :  { %511 = vmatmul.bf16.gmra.mxu1 %v407_v48 }
 0x129   :  { %v487_v51 = vpop.f32.mrf.mxu1 }
 0x12a   :  { %v488_v54 = vadd.f32 %v1260_v53, %v487_v51 }
 0x12c   :  { %v704_v56 = vadd.f32 %v664_v49, %v488_v54 }
 0x12e   :  { %v720_v61 = vmax.f32 %v704_v56, 0.0 }
 0x131   :  { %v489_v55 = vpop.f32.mrf.mxu1 }
 0x132   :  { %v490_v57 = vadd.f32 %v1260_v53, %v489_v55 }
 0x134   :  { %v705_v59 = vadd.f32 %v666_v50, %v490_v57 }
 0x135   :  { %v517_v60 = vpop.f32.mrf.mxu3 }
 0x136   :  { %v721_v62 = vmax.f32 %v705_v59, 0.0  ;;  %v518_v26 = vadd.f32 %v1260_v53, %v517_v60 }
 0x138   :  { %v975_v63 = vpack.c.bf16 %v721_v62, %v720_v61 }
 0x139   :  { %v492_v0 = vpop.f32.mrf.mxu1 }
 0x13a   :  { %976 = vst [vmem:[%s1309_s7] sm:$0xff] %v975_v63   ;;  %v493_v3 = vadd.f32 %v1260_v53, %v492_v0 }
 0x13c   :  { %v706_v5 = vadd.f32 %v669_v52, %v493_v3  ;;  %v686_v52 = vpop.f32.mrf.mxu2 }
 0x13d   :  { %v519_v1 = vpop.f32.mrf.mxu3 }
 0x13e   :  { %v722_v9 = vmax.f32 %v706_v5, 0.0  ;;  %v520_v28 = vadd.f32 %v1260_v53, %v519_v1 }
 0x141   :  { %v494_v4 = vpop.f32.mrf.mxu1 }
 0x142   :  { %v495_v6 = vadd.f32 %v1260_v53, %v494_v4 }
 0x144   :  { %v707_v7 = vadd.f32 %v671_v58, %v495_v6  ;;  %v689_v0 = vpop.f32.mrf.mxu2 }
 0x145   :  { %v522_v8 = vpop.f32.mrf.mxu3 }
 0x146   :  { %v723_v10 = vmax.f32 %v707_v7, 0.0  ;;  %v523_v46 = vadd.f32 %v1260_v53, %v522_v8 }
 0x148   :  { %v980_v12 = vpack.c.bf16 %v723_v10, %v722_v9 }
 0x149   :  { %v497_v13 = vpop.f32.mrf.mxu1 }
 0x14a   :  { %1012 = vst [vmem:[%s1309_s7 + $0x8] sm:$0xff] %v980_v12   ;;  %v498_v15 = vadd.f32 %v1260_v53, %v497_v13 }
 0x14c   :  { %v708_v18 = vadd.f32 %v674_v2, %v498_v15  ;;  %v691_v6 = vpop.f32.mrf.mxu2 }
 0x14d   :  { %v524_v14 = vpop.f32.mrf.mxu3 }
 0x14e   :  { %v724_v22 = vmax.f32 %v708_v18, 0.0  ;;  %v525_v47 = vadd.f32 %v1260_v53, %v524_v14 }
 0x151   :  { %v499_v16 = vpop.f32.mrf.mxu1 }
 0x152   :  { %v500_v19 = vadd.f32 %v1260_v53, %v499_v16 }
 0x154   :  { %v709_v20 = vadd.f32 %v676_v11, %v500_v19 }
 0x155   :  { %v694_v21 = vpop.f32.mrf.mxu3 }
 0x156   :  { %v725_v23 = vmax.f32 %v709_v20, 0.0  ;;  %v716_v29 = vadd.f32 %v694_v21, %v518_v26 }
 0x158   :  { %v985_v24 = vpack.c.bf16 %v725_v23, %v724_v22  ;;  %v732_v33 = vmax.f32 %v716_v29, 0.0 }
 0x159   :  { %v502_v25 = vpop.f32.mrf.mxu1 }
 0x15a   :  { %1013 = vst [vmem:[%s1309_s7 + $0x10] sm:$0xff] %v985_v24   ;;  %v503_v31 = vadd.f32 %v1260_v53, %v502_v25 }
 0x15c   :  { %v710_v36 = vadd.f32 %v679_v17, %v503_v31 }
 0x15d   :  { %v696_v30 = vpop.f32.mrf.mxu3 }
 0x15e   :  { %v717_v32 = vadd.f32 %v696_v30, %v520_v28  ;;  %v726_v42 = vmax.f32 %v710_v36, 0.0 }
 0x160   :  { %v733_v34 = vmax.f32 %v717_v32, 0.0 }
 0x161   :  { %v504_v35 = vpop.f32.mrf.mxu1 }
 0x162   :  { %v1005_v37 = vpack.c.bf16 %v733_v34, %v732_v33  ;;  %v505_v38 = vadd.f32 %v1260_v53, %v504_v35 }
 0x164   :  { %1017 = vst [vmem:[%s1309_s7 + $0x30] sm:$0xff] %v1005_v37   ;;  %v711_v39 = vadd.f32 %v681_v27, %v505_v38 }
 0x165   :  { %v699_v41 = vpop.f32.mrf.mxu3 }
 0x166   :  { %v727_v43 = vmax.f32 %v711_v39, 0.0  ;;  %v718_v48 = vadd.f32 %v699_v41, %v523_v46 }
 0x168   :  { %v990_v44 = vpack.c.bf16 %v727_v43, %v726_v42  ;;  %v734_v54 = vmax.f32 %v718_v48, 0.0 }
 0x169   :  { %v507_v45 = vpop.f32.mrf.mxu1 }
 0x16a   :  { %1014 = vst [vmem:[%s1309_s7 + $0x18] sm:$0xff] %v990_v44   ;;  %v508_v50 = vadd.f32 %v1260_v53, %v507_v45 }
 0x16c   :  { %v712_v57 = vadd.f32 %v684_v40, %v508_v50 }
 0x16d   :  { %v701_v49 = vpop.f32.mrf.mxu3 }
 0x16e   :  { %v719_v51 = vadd.f32 %v701_v49, %v525_v47  ;;  %v728_v61 = vmax.f32 %v712_v57, 0.0 }
 0x170   :  { %v735_v55 = vmax.f32 %v719_v51, 0.0 }
 0x171   :  { %v509_v56 = vpop.f32.mrf.mxu1 }
 0x172   :  { %v1010_v58 = vpack.c.bf16 %v735_v55, %v734_v54  ;;  %v510_v59 = vadd.f32 %v1260_v53, %v509_v56 }
 0x174   :  { %1018 = vst [vmem:[%s1309_s7 + $0x38] sm:$0xff] %v1010_v58   ;;  %v713_v60 = vadd.f32 %v686_v52, %v510_v59 }
 0x176   :  { %v729_v62 = vmax.f32 %v713_v60, 0.0 }
 0x178   :  { %v995_v63 = vpack.c.bf16 %v729_v62, %v728_v61 }
 0x179   :  { %v512_v1 = vpop.f32.mrf.mxu1 }
 0x17a   :  { %1015 = vst [vmem:[%s1309_s7 + $0x20] sm:$0xff] %v995_v63   ;;  %v513_v2 = vadd.f32 %v1260_v53, %v512_v1 }
 0x17c   :  { %v714_v4 = vadd.f32 %v689_v0, %v513_v2 }
 0x17e   :  { %v730_v8 = vmax.f32 %v714_v4, 0.0 }
 0x181   :  { %v514_v3 = vpop.f32.mrf.mxu1 }
 0x182   :  { %v515_v5 = vadd.f32 %v1260_v53, %v514_v3 }
 0x184   :  { %v715_v7 = vadd.f32 %v691_v6, %v515_v5 }
 0x186   :  { %v731_v9 = vmax.f32 %v715_v7, 0.0 }
 0x188   :  { %v1000_v10 = vpack.c.bf16 %v731_v9, %v730_v8 }
 0x18a   :  { %1016 = vst [vmem:[%s1309_s7 + $0x28] sm:$0xff] %v1000_v10  }

</bundles_post_ra>
